<compile_context>
chip_gen: v5e
topology: v5e:2x2
jax: 0.10.0
libtpu: 0.0.40
codegen_flags: <defaults>
</compile_context>

<pallas_src>
import jax
import jax.numpy as jnp
from jax.experimental import pallas as pl
from jax.experimental.pallas import tpu as pltpu


def _round_up(x, m):
    return (x + m - 1) // m * m


def mlp_kernel(x_ref, w1_ref, b1_ref, w2_ref, b2_ref, w3_ref, b3_ref, o_ref):
    # Layer 1: (TB,128)bf16 @ (128,64)bf16 -> f32 accumulate on the MXU.
    h1 = jnp.dot(x_ref[...], w1_ref[...], preferred_element_type=jnp.float32)
    h1 = jnp.maximum(h1 + b1_ref[...], 0.0)          # bias + ReLU in f32 (VPU)

    # Layer 2: (TB,64)bf16 @ (64,32)bf16 -> f32 accumulate on the MXU.
    h2 = jnp.dot(h1.astype(jnp.bfloat16), w2_ref[...],
                 preferred_element_type=jnp.float32)
    h2 = jnp.maximum(h2 + b2_ref[...], 0.0)

    # Layer 3 (out_features == 1): an N=1 matmul uses 1/128..1/256 of the MXU width,
    # so do it as a VPU multiply + lane reduction instead. w3_ref is (1, 32) f32.
    h3 = jnp.sum(h2 * w3_ref[...], axis=-1, keepdims=True)
    o_ref[...] = (h3 + b3_ref[...]).astype(o_ref.dtype)
    # TODO(synk): output stays lane-sparse (B,1); acceptable since output bytes << x bytes.


def pinexus_forward(x, w1, b1, w2, b2, w3, b3, *, tb=4096):
    """x: (B, 128) float32 -> (B, 1) float32.

    w1: (128, 64), w2: (64, 32)  -- stored as (in, out), i.e. W.T of nn.Linear
    w3: (1, 32)                  -- PyTorch fc3.weight layout (out, in), used on the VPU
    b1: (1, 64), b2: (1, 32), b3: (1, 1)
    """
    B = x.shape[0]
    # Tile: multiple of 16 rows (bf16 sublane packing); clamp to the batch for small B.
    # tb=4096 -> 1 MiB bf16 x per buffer, x2 double-buffered: fits default scoped VMEM
    # on v5e/v6e/v7x with large headroom.
    TB = min(tb, _round_up(B, 16))
    B_pad = _round_up(B, TB)
    if B_pad != B:
        x = jnp.pad(x, ((0, B_pad - B), (0, 0)))

    # HBM traffic is dominated by x: stream it (and the matmul weights) in bf16.
    xb = x.astype(jnp.bfloat16)
    w1b = w1.astype(jnp.bfloat16)
    w2b = w2.astype(jnp.bfloat16)

    n_tiles = B_pad // TB

    def weight_spec(a):
        # Full-array block, resident across all grid steps.
        return pl.BlockSpec(a.shape, lambda i: (0,) * a.ndim)

    flops = 2 * B_pad * (128 * 64 + 64 * 32 + 32)
    bytes_accessed = (B_pad * 128 * 2          # x (bf16)
                      + B_pad * 4              # output (f32)
                      + (128 * 64 + 64 * 32) * 2
                      + (64 + 32 + 32 + 1) * 4)

    out = pl.pallas_call(
        mlp_kernel,
        out_shape=jax.ShapeDtypeStruct((B_pad, 1), jnp.float32),
        grid=(n_tiles,),
        in_specs=[
            pl.BlockSpec((TB, 128), lambda i: (i, 0)),   # x: streamed / pipelined per tile
            weight_spec(w1b), weight_spec(b1),
            weight_spec(w2b), weight_spec(b2),
            weight_spec(w3), weight_spec(b3),
        ],
        out_specs=pl.BlockSpec((TB, 1), lambda i: (i, 0)),
        compiler_params=pltpu.CompilerParams(
            dimension_semantics=("parallel",)),          # megacore sharding on v7x
        cost_estimate=pl.CostEstimate(
            flops=flops, transcendentals=0, bytes_accessed=bytes_accessed),
    )(xb, w1b, b1, w2b, b2, w3, b3)
    return out[:B]


def init_params(key):
    """Deterministic init mimicking PyTorch nn.Linear default (U(-1/sqrt(fan_in), +))."""
    def linear(key, fan_in, fan_out, *, transpose_for_mxu):
        kw, kb = jax.random.split(key)
        bound = 1.0 / jnp.sqrt(fan_in)
        if transpose_for_mxu:
            w = jax.random.uniform(kw, (fan_in, fan_out), jnp.float32, -bound, bound)
        else:
            w = jax.random.uniform(kw, (fan_out, fan_in), jnp.float32, -bound, bound)
        b = jax.random.uniform(kb, (1, fan_out), jnp.float32, -bound, bound)
        return w, b

    k1, k2, k3 = jax.random.split(key, 3)
    w1, b1 = linear(k1, 128, 64, transpose_for_mxu=True)   # (128, 64)
    w2, b2 = linear(k2, 64, 32, transpose_for_mxu=True)    # (64, 32)
    w3, b3 = linear(k3, 32, 1, transpose_for_mxu=False)    # (1, 32) -> VPU reduction
    return w1, b1, w2, b2, w3, b3


def reference(x, w1, b1, w2, b2, w3, b3):
    """Pure-JAX reference matching the kernel's bf16-input / f32-accumulate path."""
    h1 = jnp.dot(x.astype(jnp.bfloat16), w1.astype(jnp.bfloat16),
                 preferred_element_type=jnp.float32)
    h1 = jnp.maximum(h1 + b1, 0.0)
    h2 = jnp.dot(h1.astype(jnp.bfloat16), w2.astype(jnp.bfloat16),
                 preferred_element_type=jnp.float32)
    h2 = jnp.maximum(h2 + b2, 0.0)
    return jnp.sum(h2 * w3, axis=-1, keepdims=True) + b3


if __name__ == "__main__":
    key = jax.random.PRNGKey(0)
    kx, kx2, kp = jax.random.split(key, 3)
    w1, b1, w2, b2, w3, b3 = init_params(kp)

    # Small batch (single tile, padded 8 -> 16 rows internally).
    B = 8
    x = jax.random.normal(kx, (B, 128), jnp.float32)
    out = jax.block_until_ready(pinexus_forward(x, w1, b1, w2, b2, w3, b3))
    ref = reference(x, w1, b1, w2, b2, w3, b3)
    assert out.shape == (B, 1)
    assert jnp.allclose(out, ref, atol=2e-3, rtol=2e-3)

    # Multi-tile + ragged-tail path (B=300 with TB=128 -> grid=3, pad 300 -> 384).
    B2 = 300
    x2 = jax.random.normal(kx2, (B2, 128), jnp.float32)
    out2 = jax.block_until_ready(pinexus_forward(x2, w1, b1, w2, b2, w3, b3, tb=128))
    ref2 = reference(x2, w1, b1, w2, b2, w3, b3)
    assert out2.shape == (B2, 1)
    assert jnp.allclose(out2, ref2, atol=2e-3, rtol=2e-3)

    print("KERNEL_OK")
</pallas_src>

<mosaic_0001>
module attributes {stable_mosaic.version = 11 : i64} {
  func.func @mlp_kernel(%arg0: i32, %arg1: memref<16x128xbf16, #tpu.memory_space<vmem>>, %arg2: memref<128x64xbf16, #tpu.memory_space<vmem>>, %arg3: memref<1x64xf32, #tpu.memory_space<vmem>>, %arg4: memref<64x32xbf16, #tpu.memory_space<vmem>>, %arg5: memref<1x32xf32, #tpu.memory_space<vmem>>, %arg6: memref<1x32xf32, #tpu.memory_space<vmem>>, %arg7: memref<1x1xf32, #tpu.memory_space<vmem>>, %arg8: memref<16x1xf32, #tpu.memory_space<vmem>>) attributes {dimension_semantics = [#tpu.dimension_semantics<parallel>], iteration_bounds = array<i64: 1>, scalar_prefetch = 0 : i64, scratch_operands = 0 : i64, tpu.core_type = #tpu.core_type<tc>, window_params = [{transform_indices = @transform_0, window_bounds = array<i64: 16, 128>}, {pipeline_mode = #tpu.pipeline_mode<synchronous>, transform_indices = @transform_1, window_bounds = array<i64: 128, 64>}, {pipeline_mode = #tpu.pipeline_mode<synchronous>, transform_indices = @transform_2, window_bounds = array<i64: 1, 64>}, {pipeline_mode = #tpu.pipeline_mode<synchronous>, transform_indices = @transform_3, window_bounds = array<i64: 64, 32>}, {pipeline_mode = #tpu.pipeline_mode<synchronous>, transform_indices = @transform_4, window_bounds = array<i64: 1, 32>}, {pipeline_mode = #tpu.pipeline_mode<synchronous>, transform_indices = @transform_5, window_bounds = array<i64: 1, 32>}, {pipeline_mode = #tpu.pipeline_mode<synchronous>, transform_indices = @transform_6, window_bounds = array<i64: 1, 1>}, {transform_indices = @transform_7, window_bounds = array<i64: 16, 1>}]} {
    %c0 = arith.constant 0 : index
    %c0_0 = arith.constant 0 : index
    %0 = vector.load %arg1[%c0, %c0_0] : memref<16x128xbf16, #tpu.memory_space<vmem>>, vector<16x128xbf16>
    %c0_1 = arith.constant 0 : index
    %c0_2 = arith.constant 0 : index
    %1 = vector.load %arg2[%c0_1, %c0_2] : memref<128x64xbf16, #tpu.memory_space<vmem>>, vector<128x64xbf16>
    %cst = arith.constant dense<0.000000e+00> : vector<16x64xf32>
    %2 = tpu.matmul %0, %1, %cst {dimension_numbers = #tpu.dot_dimension_numbers<[1], [0], [0], [1], [0, 0, 1, 1], [], []>} : vector<16x128xbf16>, vector<128x64xbf16>, vector<16x64xf32> -> vector<16x64xf32>
    %c0_3 = arith.constant 0 : index
    %c0_4 = arith.constant 0 : index
    %3 = vector.load %arg3[%c0_3, %c0_4] : memref<1x64xf32, #tpu.memory_space<vmem>>, vector<1x64xf32>
    %4 = vector.broadcast %3 : vector<1x64xf32> to vector<16x64xf32>
    %5 = arith.addf %2, %4 : vector<16x64xf32>
    %cst_5 = arith.constant 0.000000e+00 : f32
    %6 = vector.broadcast %cst_5 : f32 to vector<16x64xf32>
    %7 = arith.maximumf %5, %6 : vector<16x64xf32>
    %8 = arith.truncf %7 : vector<16x64xf32> to vector<16x64xbf16>
    %c0_6 = arith.constant 0 : index
    %c0_7 = arith.constant 0 : index
    %9 = vector.load %arg4[%c0_6, %c0_7] : memref<64x32xbf16, #tpu.memory_space<vmem>>, vector<64x32xbf16>
    %cst_8 = arith.constant dense<0.000000e+00> : vector<16x32xf32>
    %10 = tpu.matmul %8, %9, %cst_8 {dimension_numbers = #tpu.dot_dimension_numbers<[1], [0], [0], [1], [0, 0, 1, 1], [], []>} : vector<16x64xbf16>, vector<64x32xbf16>, vector<16x32xf32> -> vector<16x32xf32>
    %c0_9 = arith.constant 0 : index
    %c0_10 = arith.constant 0 : index
    %11 = vector.load %arg5[%c0_9, %c0_10] : memref<1x32xf32, #tpu.memory_space<vmem>>, vector<1x32xf32>
    %12 = vector.broadcast %11 : vector<1x32xf32> to vector<16x32xf32>
    %13 = arith.addf %10, %12 : vector<16x32xf32>
    %cst_11 = arith.constant 0.000000e+00 : f32
    %14 = vector.broadcast %cst_11 : f32 to vector<16x32xf32>
    %15 = arith.maximumf %13, %14 : vector<16x32xf32>
    %c0_12 = arith.constant 0 : index
    %c0_13 = arith.constant 0 : index
    %16 = vector.load %arg6[%c0_12, %c0_13] : memref<1x32xf32, #tpu.memory_space<vmem>>, vector<1x32xf32>
    %17 = vector.broadcast %16 : vector<1x32xf32> to vector<16x32xf32>
    %18 = arith.mulf %15, %17 : vector<16x32xf32>
    %cst_14 = arith.constant dense<0.000000e+00> : vector<16xf32>
    %19 = vector.multi_reduction <add>, %18, %cst_14 [1] : vector<16x32xf32> to vector<16xf32>
    %20 = vector.shape_cast %19 : vector<16xf32> to vector<16x1xf32>
    %c0_15 = arith.constant 0 : index
    %c0_16 = arith.constant 0 : index
    %21 = vector.load %arg7[%c0_15, %c0_16] : memref<1x1xf32, #tpu.memory_space<vmem>>, vector<1x1xf32>
    %22 = vector.broadcast %21 : vector<1x1xf32> to vector<16x1xf32>
    %23 = arith.addf %20, %22 : vector<16x1xf32>
    %c0_17 = arith.constant 0 : index
    %c0_18 = arith.constant 0 : index
    %24 = vector.load %arg8[%c0_17, %c0_18] : memref<16x1xf32, #tpu.memory_space<vmem>>, vector<16x1xf32>
    tpu.vector_store %arg8[%c0_17, %c0_18], %23 {strides = array<i32>} : memref<16x1xf32, #tpu.memory_space<vmem>>, vector<16x1xf32>,
    return
  }
  func.func @transform_0(%arg0: i32) -> (i32, i32) {
    %c0_i32 = arith.constant 0 : i32
    %c0_i32_0 = arith.constant 0 : i32
    return %arg0, %c0_i32 : i32, i32
  }
  func.func @transform_1(%arg0: i32) -> (i32, i32) {
    %c0_i32 = arith.constant 0 : i32
    %c0_i32_0 = arith.constant 0 : i32
    %c0_i32_1 = arith.constant 0 : i32
    return %c0_i32, %c0_i32_0 : i32, i32
  }
  func.func @transform_2(%arg0: i32) -> (i32, i32) {
    %c0_i32 = arith.constant 0 : i32
    %c0_i32_0 = arith.constant 0 : i32
    %c0_i32_1 = arith.constant 0 : i32
    return %c0_i32, %c0_i32_0 : i32, i32
  }
  func.func @transform_3(%arg0: i32) -> (i32, i32) {
    %c0_i32 = arith.constant 0 : i32
    %c0_i32_0 = arith.constant 0 : i32
    %c0_i32_1 = arith.constant 0 : i32
    return %c0_i32, %c0_i32_0 : i32, i32
  }
  func.func @transform_4(%arg0: i32) -> (i32, i32) {
    %c0_i32 = arith.constant 0 : i32
    %c0_i32_0 = arith.constant 0 : i32
    %c0_i32_1 = arith.constant 0 : i32
    return %c0_i32, %c0_i32_0 : i32, i32
  }
  func.func @transform_5(%arg0: i32) -> (i32, i32) {
    %c0_i32 = arith.constant 0 : i32
    %c0_i32_0 = arith.constant 0 : i32
    %c0_i32_1 = arith.constant 0 : i32
    return %c0_i32, %c0_i32_0 : i32, i32
  }
  func.func @transform_6(%arg0: i32) -> (i32, i32) {
    %c0_i32 = arith.constant 0 : i32
    %c0_i32_0 = arith.constant 0 : i32
    %c0_i32_1 = arith.constant 0 : i32
    return %c0_i32, %c0_i32_0 : i32, i32
  }
  func.func @transform_7(%arg0: i32) -> (i32, i32) {
    %c0_i32 = arith.constant 0 : i32
    %c0_i32_0 = arith.constant 0 : i32
    return %arg0, %c0_i32 : i32, i32
  }
}

</mosaic_0001>

<bundles_post_ra>
// kernel: tpu_custom_call.1
= control target key start
LH: loop header
LB: loop body
LE: loop exit
PB: predicated region body
PF: predicated region fallthrough
CT: control target
= control target key end

     0   :  { %vm158_vm0 = vcmask 523264   ;;  %vm184_vm1 = vcmask 261120   ;;  %vm197_vm2 = vcmask 7168   ;;  %s371_s1 = inlined_call_operand.vmem [shape: bf16[128,64], index: 1, kind: input, shape index: {}]   ;;  %s372_s2 = inlined_call_operand.vmem [shape: f32[1,64], index: 2, kind: input, shape index: {}]   ;;  %s373_s0 = inlined_call_operand.vmem [shape: bf16[16,128], index: 0, kind: input, shape index: {}]   ;;  %s374_s4 = inlined_call_operand.vmem [shape: f32[1,32], index: 4, kind: input, shape index: {}]   ;;  %s375_s3 = inlined_call_operand.vmem [shape: bf16[64,32], index: 3, kind: input, shape index: {}]   ;;  %s376_s5 = inlined_call_operand.vmem [shape: f32[1,32], index: 5, kind: input, shape index: {}]   ;;  %s377_s6 = inlined_call_operand.<no memory space> [shape: f32[1,1], index: 6, kind: input, shape index: {}]   ;;  %s378_s7 = inlined_call_operand.vmem [shape: f32[16,1], index: 7, kind: output, shape index: {}]  }
   0x1   :  { %v265_v0 = vld [vmem:[%s371_s1 + $0x38] sm:$0xff]  ;;  %v264_v1 = vld [vmem:[%s371_s1 + $0x30] sm:$0xff]  ;;  %v263_v2 = vld [vmem:[%s371_s1 + $0x28] sm:$0xff]  ;;  %v12_v21 = vstv %s377_s6 }
   0x2   :  { %105 = vmatpush.bf16.msra.mxu0 %v265_v0  ;;  %v262_v3 = vld [vmem:[%s371_s1 + $0x20] sm:$0xff]  ;;  %v261_v4 = vld [vmem:[%s371_s1 + $0x18] sm:$0xff]  ;;  %v260_v5 = vld [vmem:[%s371_s1 + $0x10] sm:$0xff]  ;;  %13 = vst [vmem:[#allocation2] sm:$0x1] %v12_v21 }
   0x3   :  { %v259_v6 = vld [vmem:[%s371_s1 + $0x8] sm:$0xff]  ;;  %v258_v7 = vld [vmem:[%s371_s1] sm:$0xff]  ;;  %v269_v9 = vld [vmem:[%s375_s3 + $0x18] sm:$0xff] }
   0x4   :  { %v257_v8 = vld [vmem:[%s373_s0] sm:$0xff]  ;;  %166 = vmatpush.bf16.msra.mxu1 %v269_v9  ;;  %v268_v10 = vld [vmem:[%s375_s3 + $0x10] sm:$0xff]  ;;  %v267_v11 = vld [vmem:[%s375_s3 + $0x8] sm:$0xff] }
   0x5   :  { %v266_v12 = vld [vmem:[%s375_s3] sm:$0xff] }
   0x6   :  { %106 = vmatpush.bf16.msra.mxu0 %v264_v1  ;;  %v270_v14 = vld [vmem:[%s372_s2] ss:$0 sm:$0xff] }
   0x7   :  { %v271_v22 = vld [vmem:[%s374_s4] ss:$0 sm:$0xff] }
   0x8   :  { %167 = vmatpush.bf16.msra.mxu1 %v268_v10  ;;  %v272_v25 = vld [vmem:[%s376_s5] ss:$0 sm:$0xff] }
   0x9   :  { %v273_v34 = vld [vmem:[#allocation2] ss:$0 sm:$0xff] }
   0xa   :  { %107 = vmatpush.bf16.msra.mxu0 %v263_v2 }
   0xc   :  { %168 = vmatpush.bf16.msra.mxu1 %v267_v11 }
   0xe   :  { %108 = vmatpush.bf16.msra.mxu0 %v262_v3 }
  0x10   :  { %169 = vmatpush.bf16.msra.mxu1 %v266_v12 }
  0x12   :  { %109 = vmatpush.bf16.msra.mxu0 %v261_v4 }
  0x16   :  { %110 = vmatpush.bf16.msra.mxu0 %v260_v5 }
  0x1a   :  { %111 = vmatpush.bf16.msra.mxu0 %v259_v6 }
  0x1e   :  { %112 = vmatpush.bf16.msra.mxu0 %v258_v7 }
  0x21   :  { %113 = vmatmul.bf16.vlgmr.msra.gmra.mxu0 %v257_v8 }
  0x9e   :  { %v114_v13 = vpop.f32.mrf.mxu0 }
  0x9f   :  { %v115_v15 = vadd.f32 %v270_v14, %v114_v13 }
  0xa1   :  { %v119_v18 = vmax.f32 %v115_v15, 0.0 }
  0xa6   :  { %v116_v16 = vpop.f32.mrf.mxu0 }
  0xa7   :  { %v117_v17 = vadd.f32 %v270_v14, %v116_v16 }
  0xa9   :  { %v120_v19 = vmax.f32 %v117_v17, 0.0 }
  0xab   :  { %v121_v20 = vpack.c.bf16 %v120_v19, %v119_v18 }
  0xad   :  { %256 = vmatmul.msk.bf16.vlgmr.msra.gmra.mxu1 %vm158_vm0, %v121_v20 }
 0x12a   :  { %v171_v23 = vpop.f32.mrf.mxu1 }
 0x12b   :  { %v172_v24 = vadd.f32 %v271_v22, %v171_v23 }
 0x12d   :  { %v176_v26 = vmax.f32 %v172_v24, 0.0 }
 0x12f   :  { %v182_v27 = vmul.f32 %v272_v25, %v176_v26 }
 0x131   :  { %v185_v28 = vsel %vm184_vm1, %v182_v27, 0.0 }
 0x132   :  { %v173_v29 = vpop.f32.mrf.mxu1  ;;  %186 = vadd.xlane.f32.xlu0 %v185_v28 }
 0x133   :  { %v174_v30 = vadd.f32 %v271_v22, %v173_v29 }
 0x135   :  { %v177_v31 = vmax.f32 %v174_v30, 0.0 }
 0x137   :  { %v183_v32 = vmul.f32 %v272_v25, %v177_v31 }
 0x139   :  { %v188_v33 = vsel %vm184_vm1, %v183_v32, 0.0 }
 0x13a   :  { %189 = vadd.xlane.f32.xlu0 %v188_v33 }
 0x1a5   :  { %v187_v35 = vpop.xlane.xlu0 %186 }
 0x1a6   :  { %v195_v36 = vadd.f32 %v273_v34, %v187_v35 }
 0x1a8   :  { %198 = vst.msk [vmem:[%s378_s7] sm:$0xff] %vm197_vm2, %v195_v36 }
 0x1ad   :  { %v190_v37 = vpop.xlane.xlu0 %189 }
 0x1ae   :  { %v196_v38 = vadd.f32 %v273_v34, %v190_v37 }
 0x1b0   :  { %199 = vst.msk [vmem:[%s378_s7 + $0x8] sm:$0xff] %vm197_vm2, %v196_v38 }

</bundles_post_ra>
